<compile_context>
chip_gen: v7x
topology: tpu7x:2x2x1
jax: 0.10.0
libtpu: 0.0.40
codegen_flags: <defaults>
</compile_context>

<pallas_src>
import jax
import jax.numpy as jnp
from jax.experimental import pallas as pl
from jax.experimental.pallas import tpu as pltpu


def embedder_double_kernel(idx_ref, t2_ref, t3_ref,
                           w2_ref, b2_ref, w3_ref, b3_ref,
                           w4_ref, b4_ref, out_ref):
    n = idx_ref.shape[0]
    cat2 = t2_ref.shape[0]
    cat3 = t3_ref.shape[0]

    idx = idx_ref[...]                      # (TILE_N, 2) int32
    idx2 = idx[:, 0:1]                      # (TILE_N, 1)
    idx3 = idx[:, 1:2]                      # (TILE_N, 1)

    # Embedding lookup via one-hot matmul against the *fused* tables
    # (embedding row already multiplied by the first Linear's weights).
    oh2 = (jax.lax.broadcasted_iota(jnp.int32, (n, cat2), 1) == idx2
           ).astype(jnp.float32)            # (TILE_N, cat2)
    oh3 = (jax.lax.broadcasted_iota(jnp.int32, (n, cat3), 1) == idx3
           ).astype(jnp.float32)            # (TILE_N, cat3)

    # Layer 1 (fused): relu(onehot2 @ T2 + onehot3 @ T3); b1 folded into T2.
    h = jnp.maximum(
        jnp.dot(oh2, t2_ref[...], preferred_element_type=jnp.float32)
        + jnp.dot(oh3, t3_ref[...], preferred_element_type=jnp.float32), 0.0)

    # Remaining MLP: Linear -> ReLU -> (Dropout=identity) x2, final Linear.
    h = jnp.maximum(
        jnp.dot(h, w2_ref[...], preferred_element_type=jnp.float32) + b2_ref[...], 0.0)
    h = jnp.maximum(
        jnp.dot(h, w3_ref[...], preferred_element_type=jnp.float32) + b3_ref[...], 0.0)
    out_ref[...] = (
        jnp.dot(h, w4_ref[...], preferred_element_type=jnp.float32) + b4_ref[...])
    # TODO(synk): training-mode Dropout(0.5) (scaled Bernoulli masks via
    # pltpu.prng_random_bits) is omitted; forward here matches eval() semantics.


def embedder_double_forward(x2, x3, params, *, tile_n=1024):
    """x2, x3: (N,) int index arrays. Returns (N, 3) float32 logits."""
    (emb2, emb3, w1, b1, w2, b2, w3, b3, w4, b4) = params
    d = emb2.shape[1]

    # Fold embedding lookup + first Linear (and its bias) into small tables.
    t2 = emb2 @ w1[:d, :] + b1              # (cat2, 32)
    t3 = emb3 @ w1[d:, :]                   # (cat3, 32)

    n = x2.shape[0]
    idx = jnp.stack(
        [x2.astype(jnp.int32), x3.astype(jnp.int32)], axis=1)   # (N, 2)

    # Tile size: multiple of 8, never larger than the (rounded-up) batch.
    tile_n = min(tile_n, max(8, ((n + 7) // 8) * 8))
    n_pad = ((n + tile_n - 1) // tile_n) * tile_n
    if n_pad != n:
        idx = jnp.pad(idx, ((0, n_pad - n), (0, 0)))  # pad w/ index 0 (in range)

    def resident(shape):
        # Weight / table blocks: full array, same block every step -> stays
        # VMEM-resident (no re-DMA across grid iterations).
        return pl.BlockSpec(shape, lambda i: (0, 0))

    out = pl.pallas_call(
        embedder_double_kernel,
        out_shape=jax.ShapeDtypeStruct((n_pad, 3), jnp.float32),
        grid=(n_pad // tile_n,),
        in_specs=[
            pl.BlockSpec((tile_n, 2), lambda i: (i, 0)),   # packed indices
            resident(t2.shape), resident(t3.shape),
            resident(w2.shape), resident(b2.shape),
            resident(w3.shape), resident(b3.shape),
            resident(w4.shape), resident(b4.shape),
        ],
        out_specs=pl.BlockSpec((tile_n, 3), lambda i: (i, 0)),
        compiler_params=pltpu.CompilerParams(
            dimension_semantics=("parallel",)),
    )(idx, t2, t3, w2, b2, w3, b3, w4, b4)
    return out[:n]


def init_params(key, cat_2_size, cat_3_size, embed_dim):
    """Deterministic synthetic parameters. Linear weights stored as (in, out)."""
    ks = jax.random.split(key, 10)
    emb2 = jax.random.normal(ks[0], (cat_2_size, embed_dim), jnp.float32)
    emb3 = jax.random.normal(ks[1], (cat_3_size, embed_dim), jnp.float32)

    def linear(kw, kb, fan_in, fan_out):
        bound = 1.0 / jnp.sqrt(fan_in)
        w = jax.random.uniform(kw, (fan_in, fan_out), jnp.float32, -bound, bound)
        b = jax.random.uniform(kb, (1, fan_out), jnp.float32, -bound, bound)
        return w, b

    w1, b1 = linear(ks[2], ks[3], embed_dim * 2, 32)
    w2, b2 = linear(ks[4], ks[5], 32, 32)
    w3, b3 = linear(ks[6], ks[7], 32, 16)
    w4, b4 = linear(ks[8], ks[9], 16, 3)
    return (emb2, emb3, w1, b1, w2, b2, w3, b3, w4, b4)


def reference_forward(x2, x3, params):
    (emb2, emb3, w1, b1, w2, b2, w3, b3, w4, b4) = params
    e2 = emb2[x2]
    e3 = emb3[x3]
    h = jnp.concatenate([e2, e3], axis=1)
    h = jnp.maximum(h @ w1 + b1, 0.0)
    h = jnp.maximum(h @ w2 + b2, 0.0)
    h = jnp.maximum(h @ w3 + b3, 0.0)
    return h @ w4 + b4


if __name__ == "__main__":
    cat_2_size, cat_3_size, embed_dim = 10, 12, 16
    n = 8

    key = jax.random.PRNGKey(0)
    kp, k2, k3 = jax.random.split(key, 3)
    params = init_params(kp, cat_2_size, cat_3_size, embed_dim)

    x2 = jax.random.randint(k2, (n,), 0, cat_2_size, dtype=jnp.int32)
    x3 = jax.random.randint(k3, (n,), 0, cat_3_size, dtype=jnp.int32)

    logits = embedder_double_forward(x2, x3, params)
    jax.block_until_ready(logits)

    ref = reference_forward(x2, x3, params)
    assert logits.shape == (n, 3)
    assert jnp.allclose(logits, ref, atol=1e-5, rtol=1e-5), "mismatch vs reference"

    # Second check: batch larger than one tile (exercises the grid + padding).
    n_big = 2500
    kb2, kb3 = jax.random.split(jax.random.PRNGKey(1))
    xb2 = jax.random.randint(kb2, (n_big,), 0, cat_2_size, dtype=jnp.int32)
    xb3 = jax.random.randint(kb3, (n_big,), 0, cat_3_size, dtype=jnp.int32)
    big = embedder_double_forward(xb2, xb3, params, tile_n=1024)
    jax.block_until_ready(big)
    big_ref = reference_forward(xb2, xb3, params)
    assert big.shape == (n_big, 3)
    assert jnp.allclose(big, big_ref, atol=1e-5, rtol=1e-5), "mismatch (tiled)"

    print("KERNEL_OK")
</pallas_src>

<mosaic_0001>
module attributes {stable_mosaic.version = 11 : i64} {
  func.func @embedder_double_kernel(%arg0: i32, %arg1: memref<8x2xi32, #tpu.memory_space<vmem>>, %arg2: memref<10x32xf32, #tpu.memory_space<vmem>>, %arg3: memref<12x32xf32, #tpu.memory_space<vmem>>, %arg4: memref<32x32xf32, #tpu.memory_space<vmem>>, %arg5: memref<1x32xf32, #tpu.memory_space<vmem>>, %arg6: memref<32x16xf32, #tpu.memory_space<vmem>>, %arg7: memref<1x16xf32, #tpu.memory_space<vmem>>, %arg8: memref<16x3xf32, #tpu.memory_space<vmem>>, %arg9: memref<1x3xf32, #tpu.memory_space<vmem>>, %arg10: memref<8x3xf32, #tpu.memory_space<vmem>>) attributes {dimension_semantics = [#tpu.dimension_semantics<parallel>], iteration_bounds = array<i64: 1>, scalar_prefetch = 0 : i64, scratch_operands = 0 : i64, tpu.core_type = #tpu.core_type<tc>, window_params = [{transform_indices = @transform_0, window_bounds = array<i64: 8, 2>}, {pipeline_mode = #tpu.pipeline_mode<synchronous>, transform_indices = @transform_1, window_bounds = array<i64: 10, 32>}, {pipeline_mode = #tpu.pipeline_mode<synchronous>, transform_indices = @transform_2, window_bounds = array<i64: 12, 32>}, {pipeline_mode = #tpu.pipeline_mode<synchronous>, transform_indices = @transform_3, window_bounds = array<i64: 32, 32>}, {pipeline_mode = #tpu.pipeline_mode<synchronous>, transform_indices = @transform_4, window_bounds = array<i64: 1, 32>}, {pipeline_mode = #tpu.pipeline_mode<synchronous>, transform_indices = @transform_5, window_bounds = array<i64: 32, 16>}, {pipeline_mode = #tpu.pipeline_mode<synchronous>, transform_indices = @transform_6, window_bounds = array<i64: 1, 16>}, {pipeline_mode = #tpu.pipeline_mode<synchronous>, transform_indices = @transform_7, window_bounds = array<i64: 16, 3>}, {pipeline_mode = #tpu.pipeline_mode<synchronous>, transform_indices = @transform_8, window_bounds = array<i64: 1, 3>}, {transform_indices = @transform_9, window_bounds = array<i64: 8, 3>}]} {
    %c0 = arith.constant 0 : index
    %c0_0 = arith.constant 0 : index
    %0 = vector.load %arg1[%c0, %c0_0] : memref<8x2xi32, #tpu.memory_space<vmem>>, vector<8x2xi32>
    %1 = vector.extract_strided_slice %0 {offsets = [0, 0], sizes = [8, 1], strides = [1, 1]} : vector<8x2xi32> to vector<8x1xi32>
    %2 = vector.extract_strided_slice %0 {offsets = [0, 1], sizes = [8, 1], strides = [1, 1]} : vector<8x2xi32> to vector<8x1xi32>
    %3 = tpu.iota {dimensions = array<i32: 1>} : vector<8x10xi32>
    %4 = vector.broadcast %1 : vector<8x1xi32> to vector<8x10xi32>
    %5 = arith.cmpi eq, %3, %4 : vector<8x10xi32>
    %6 = arith.extui %5 : vector<8x10xi1> to vector<8x10xi32>
    %7 = arith.sitofp %6 : vector<8x10xi32> to vector<8x10xf32>
    %8 = tpu.iota {dimensions = array<i32: 1>} : vector<8x12xi32>
    %9 = vector.broadcast %2 : vector<8x1xi32> to vector<8x12xi32>
    %10 = arith.cmpi eq, %8, %9 : vector<8x12xi32>
    %11 = arith.extui %10 : vector<8x12xi1> to vector<8x12xi32>
    %12 = arith.sitofp %11 : vector<8x12xi32> to vector<8x12xf32>
    %c0_1 = arith.constant 0 : index
    %c0_2 = arith.constant 0 : index
    %13 = vector.load %arg2[%c0_1, %c0_2] : memref<10x32xf32, #tpu.memory_space<vmem>>, vector<10x32xf32>
    %cst = arith.constant dense<0.000000e+00> : vector<8x32xf32>
    %14 = tpu.matmul %7, %13, %cst {dimension_numbers = #tpu.dot_dimension_numbers<[1], [0], [0], [1], [0, 0, 1, 1], [], []>} : vector<8x10xf32>, vector<10x32xf32>, vector<8x32xf32> -> vector<8x32xf32>
    %c0_3 = arith.constant 0 : index
    %c0_4 = arith.constant 0 : index
    %15 = vector.load %arg3[%c0_3, %c0_4] : memref<12x32xf32, #tpu.memory_space<vmem>>, vector<12x32xf32>
    %cst_5 = arith.constant dense<0.000000e+00> : vector<8x32xf32>
    %16 = tpu.matmul %12, %15, %cst_5 {dimension_numbers = #tpu.dot_dimension_numbers<[1], [0], [0], [1], [0, 0, 1, 1], [], []>} : vector<8x12xf32>, vector<12x32xf32>, vector<8x32xf32> -> vector<8x32xf32>
    %17 = arith.addf %14, %16 : vector<8x32xf32>
    %cst_6 = arith.constant 0.000000e+00 : f32
    %18 = vector.broadcast %cst_6 : f32 to vector<8x32xf32>
    %19 = arith.maximumf %17, %18 : vector<8x32xf32>
    %c0_7 = arith.constant 0 : index
    %c0_8 = arith.constant 0 : index
    %20 = vector.load %arg4[%c0_7, %c0_8] : memref<32x32xf32, #tpu.memory_space<vmem>>, vector<32x32xf32>
    %cst_9 = arith.constant dense<0.000000e+00> : vector<8x32xf32>
    %21 = tpu.matmul %19, %20, %cst_9 {dimension_numbers = #tpu.dot_dimension_numbers<[1], [0], [0], [1], [0, 0, 1, 1], [], []>} : vector<8x32xf32>, vector<32x32xf32>, vector<8x32xf32> -> vector<8x32xf32>
    %c0_10 = arith.constant 0 : index
    %c0_11 = arith.constant 0 : index
    %22 = vector.load %arg5[%c0_10, %c0_11] : memref<1x32xf32, #tpu.memory_space<vmem>>, vector<1x32xf32>
    %23 = vector.broadcast %22 : vector<1x32xf32> to vector<8x32xf32>
    %24 = arith.addf %21, %23 : vector<8x32xf32>
    %cst_12 = arith.constant 0.000000e+00 : f32
    %25 = vector.broadcast %cst_12 : f32 to vector<8x32xf32>
    %26 = arith.maximumf %24, %25 : vector<8x32xf32>
    %c0_13 = arith.constant 0 : index
    %c0_14 = arith.constant 0 : index
    %27 = vector.load %arg6[%c0_13, %c0_14] : memref<32x16xf32, #tpu.memory_space<vmem>>, vector<32x16xf32>
    %cst_15 = arith.constant dense<0.000000e+00> : vector<8x16xf32>
    %28 = tpu.matmul %26, %27, %cst_15 {dimension_numbers = #tpu.dot_dimension_numbers<[1], [0], [0], [1], [0, 0, 1, 1], [], []>} : vector<8x32xf32>, vector<32x16xf32>, vector<8x16xf32> -> vector<8x16xf32>
    %c0_16 = arith.constant 0 : index
    %c0_17 = arith.constant 0 : index
    %29 = vector.load %arg7[%c0_16, %c0_17] : memref<1x16xf32, #tpu.memory_space<vmem>>, vector<1x16xf32>
    %30 = vector.broadcast %29 : vector<1x16xf32> to vector<8x16xf32>
    %31 = arith.addf %28, %30 : vector<8x16xf32>
    %cst_18 = arith.constant 0.000000e+00 : f32
    %32 = vector.broadcast %cst_18 : f32 to vector<8x16xf32>
    %33 = arith.maximumf %31, %32 : vector<8x16xf32>
    %c0_19 = arith.constant 0 : index
    %c0_20 = arith.constant 0 : index
    %34 = vector.load %arg8[%c0_19, %c0_20] : memref<16x3xf32, #tpu.memory_space<vmem>>, vector<16x3xf32>
    %cst_21 = arith.constant dense<0.000000e+00> : vector<8x3xf32>
    %35 = tpu.matmul %33, %34, %cst_21 {dimension_numbers = #tpu.dot_dimension_numbers<[1], [0], [0], [1], [0, 0, 1, 1], [], []>} : vector<8x16xf32>, vector<16x3xf32>, vector<8x3xf32> -> vector<8x3xf32>
    %c0_22 = arith.constant 0 : index
    %c0_23 = arith.constant 0 : index
    %36 = vector.load %arg9[%c0_22, %c0_23] : memref<1x3xf32, #tpu.memory_space<vmem>>, vector<1x3xf32>
    %37 = vector.broadcast %36 : vector<1x3xf32> to vector<8x3xf32>
    %38 = arith.addf %35, %37 : vector<8x3xf32>
    %c0_24 = arith.constant 0 : index
    %c0_25 = arith.constant 0 : index
    %39 = vector.load %arg10[%c0_24, %c0_25] : memref<8x3xf32, #tpu.memory_space<vmem>>, vector<8x3xf32>
    tpu.vector_store %arg10[%c0_24, %c0_25], %38 {strides = array<i32>} : memref<8x3xf32, #tpu.memory_space<vmem>>, vector<8x3xf32>,
    return
  }
  func.func @transform_0(%arg0: i32) -> (i32, i32) {
    %c0_i32 = arith.constant 0 : i32
    %c0_i32_0 = arith.constant 0 : i32
    return %arg0, %c0_i32 : i32, i32
  }
  func.func @transform_1(%arg0: i32) -> (i32, i32) {
    %c0_i32 = arith.constant 0 : i32
    %c0_i32_0 = arith.constant 0 : i32
    %c0_i32_1 = arith.constant 0 : i32
    return %c0_i32, %c0_i32_0 : i32, i32
  }
  func.func @transform_2(%arg0: i32) -> (i32, i32) {
    %c0_i32 = arith.constant 0 : i32
    %c0_i32_0 = arith.constant 0 : i32
    %c0_i32_1 = arith.constant 0 : i32
    return %c0_i32, %c0_i32_0 : i32, i32
  }
  func.func @transform_3(%arg0: i32) -> (i32, i32) {
    %c0_i32 = arith.constant 0 : i32
    %c0_i32_0 = arith.constant 0 : i32
    %c0_i32_1 = arith.constant 0 : i32
    return %c0_i32, %c0_i32_0 : i32, i32
  }
  func.func @transform_4(%arg0: i32) -> (i32, i32) {
    %c0_i32 = arith.constant 0 : i32
    %c0_i32_0 = arith.constant 0 : i32
    %c0_i32_1 = arith.constant 0 : i32
    return %c0_i32, %c0_i32_0 : i32, i32
  }
  func.func @transform_5(%arg0: i32) -> (i32, i32) {
    %c0_i32 = arith.constant 0 : i32
    %c0_i32_0 = arith.constant 0 : i32
    %c0_i32_1 = arith.constant 0 : i32
    return %c0_i32, %c0_i32_0 : i32, i32
  }
  func.func @transform_6(%arg0: i32) -> (i32, i32) {
    %c0_i32 = arith.constant 0 : i32
    %c0_i32_0 = arith.constant 0 : i32
    %c0_i32_1 = arith.constant 0 : i32
    return %c0_i32, %c0_i32_0 : i32, i32
  }
  func.func @transform_7(%arg0: i32) -> (i32, i32) {
    %c0_i32 = arith.constant 0 : i32
    %c0_i32_0 = arith.constant 0 : i32
    %c0_i32_1 = arith.constant 0 : i32
    return %c0_i32, %c0_i32_0 : i32, i32
  }
  func.func @transform_8(%arg0: i32) -> (i32, i32) {
    %c0_i32 = arith.constant 0 : i32
    %c0_i32_0 = arith.constant 0 : i32
    %c0_i32_1 = arith.constant 0 : i32
    return %c0_i32, %c0_i32_0 : i32, i32
  }
  func.func @transform_9(%arg0: i32) -> (i32, i32) {
    %c0_i32 = arith.constant 0 : i32
    %c0_i32_0 = arith.constant 0 : i32
    return %arg0, %c0_i32 : i32, i32
  }
}

</mosaic_0001>

<bundles_post_ra>
// kernel: tpu_custom_call.1
= control target key start
LH: loop header
LB: loop body
LE: loop exit
PB: predicated region body
PF: predicated region fallthrough
CT: control target
= control target key end

     0   :  { %vm55_vm0 = vcmask 1043456   ;;  %v576_v0 = vmov 1   ;;  %v577_v2 = vmov 0.0|0.0   ;;  %vm578_vm1 = vmmov 1   ;;  %s696_s0 = inlined_call_operand.vmem [shape: s32[8,2], index: 0, kind: input, shape index: {}]   ;;  %s697_s2 = inlined_call_operand.vmem [shape: f32[12,32], index: 2, kind: input, shape index: {}]   ;;  %s698_s3 = inlined_call_operand.vmem [shape: f32[32,32], index: 3, kind: input, shape index: {}]   ;;  %s699_s1 = inlined_call_operand.vmem [shape: f32[10,32], index: 1, kind: input, shape index: {}]   ;;  %s700_s5 = inlined_call_operand.vmem [shape: f32[32,16], index: 5, kind: input, shape index: {}]   ;;  %s701_s4 = inlined_call_operand.vmem [shape: f32[1,32], index: 4, kind: input, shape index: {}]   ;;  %s702_s7 = inlined_call_operand.vmem [shape: f32[16,3], index: 7, kind: input, shape index: {}]   ;;  %s703_s6 = inlined_call_operand.vmem [shape: f32[1,16], index: 6, kind: input, shape index: {}]   ;;  %s704_s8 = inlined_call_operand.vmem [shape: f32[1,3], index: 8, kind: input, shape index: {}]   ;;  %s705_s9 = inlined_call_operand.vmem [shape: f32[8,3], index: 9, kind: output, shape index: {}]  }
   0x1   :  { %573 = vset.pattern.permute.xlu0 %v576_v0  ;;  %v32_v1 = vld [vmem:[%s696_s0] sm:$0xff]  ;;  %542 = vmatprep.subr.bf16.mxu0 %v577_v2  ;;  %v50_v4 = vld [vmem:[%s697_s2 + $0x8] sm:$0xf]  ;;  %vm544_vm2 = vmpackc.low %vm55_vm0, %vm578_vm1  ;;  %vm579_vm3 = vmmov 0   ;;  %v580_v6 = vmov 0.0   ;;  %v581_v7 = vmov 0   ;;  %v33_v11 = vlaneseq }
   0x2   :  { %v49_v3 = vld [vmem:[%s697_s2] sm:$0xff]  ;;  %42 = vperm.xlu0 %573, %v32_v1   ;;  %550 = vmatprep.subr.bf16.mxu1 %v577_v2  ;;  %v209_v9 = vld [vmem:[%s698_s3 + $0x8] sm:$0xff]  ;;  %vm133_vm4 = vcmask 1041408   ;;  %vm51_vm5 = vcmask 97280   ;;  %vm129_vm9 = vcmask 80896   ;;  %v210_v20 = vld [vmem:[%s698_s3 + $0x10] sm:$0xff] }
   0x3   :  { %v543_v5 = vpack.c.bf16 %v50_v4, %v49_v3  ;;  %503 = vmatprep.mubr.msk.f32.mxu0 %vm579_vm3, %v580_v6  ;;  %521 = vmatprep.mubr.msk.f32.mxu1 %vm579_vm3, %v580_v6  ;;  %v208_v8 = vld [vmem:[%s698_s3] sm:$0xff]  ;;  %v34_v12 = vand.u32 127, %v33_v11  ;;  %v48_v14 = vld [vmem:[%s699_s1 + $0x8] sm:$0x3]  ;;  %vm548_vm6 = vmpackc.low %vm133_vm4, %vm578_vm1  ;;  %vm219_vm10 = vcmask 261120   ;;  %vm388_vm11 = vcmask 130048  }
   0x4   :  { %v551_v10 = vpack.c.bf16 %v209_v9, %v208_v8  ;;  %v47_v13 = vld [vmem:[%s699_s1] sm:$0xff]  ;;  %v211_v21 = vld [vmem:[%s698_s3 + $0x18] sm:$0xff]  ;;  %v295_v24 = vld [vmem:[%s700_s5 + $0x8] sm:$0xff]  ;;  %vm462_vm12 = vcmask 23552  }
   0x5   :  { %545 = vmatpush3.bf16.msk.msra.mxu0 %vm544_vm2, %v543_v5  ;;  %v547_v16 = vpack.c.bf16 %v48_v14, %v47_v13  ;;  %v554_v22 = vpack.c.bf16 %v211_v21, %v210_v20  ;;  %v294_v23 = vld [vmem:[%s700_s5] sm:$0xff]  ;;  %v296_v29 = vld [vmem:[%s700_s5 + $0x10] sm:$0xff]  ;;  %v297_v30 = vld [vmem:[%s700_s5 + $0x18] sm:$0xff] }
   0x6   :  { %546 = vmatprep.subr.bf16.mxu0 %v577_v2  ;;  %574 = vset.pattern.permute.xlu0 %v581_v7  ;;  %v557_v25 = vpack.c.bf16 %v295_v24, %v294_v23  ;;  %v560_v31 = vpack.c.bf16 %v297_v30, %v296_v29  ;;  %v474_v32 = vld [vmem:[%s701_s4] ss:$0 sm:$0xff]  ;;  %v380_v38 = vld [vmem:[%s702_s7 + $0x8] sm:$0xff] }
   0x7   :  { %36 = vperm.xlu0 %574, %v32_v1   ;;  %552 = vmatpush3.bf16.msra.mxu1 %v551_v10  ;;  %v379_v37 = vld [vmem:[%s702_s7] sm:$0xff] }
   0x8   :  { %553 = vmatprep.subr.bf16.mxu1 %v577_v2  ;;  %v563_v39 = vpack.c.bf16 %v380_v38, %v379_v37  ;;  %v476_v40 = vld [vmem:[%s703_s6] ss:$0 sm:$0xff] }
   0x9   :  { %v478_v45 = vld [vmem:[%s704_s8] ss:$0 sm:$0xff] }
   0xb   :  { %575 = vset.pattern.permute.xlu0 %v576_v0  ;;  %555 = vmatpush3.bf16.msra.mxu1 %v554_v22 }
   0xc   :  { %562 = vmatprep.subr.bf16.mxu1 %v577_v2 }
  0x81   :  { %v43_v15 = vpop.permute.xlu0 %42 }
  0x82   :  { %vm44_vm7 = vcmp.eq.s32.totalorder %v34_v12, %v43_v15 }
  0x83   :  { %v469_v17 = vsel %vm44_vm7, 1.0, %v580_v6 }
  0x84   :  { %504 = vmatmul.mubr.msk.f32.vlgmr.msra.gmra.mrb[0].mxu0 %vm51_vm5, %v469_v17 }
  0x85   :  { %549 = vmatpush3.bf16.msk.msra.mxu0 %vm548_vm6, %v547_v16  ;;  %510 = vmatprep.mubr.msk.f32.mxu0 %vm579_vm3, %v580_v6 }
  0x86   :  { %v37_v18 = vpop.permute.xlu0 %36  ;;  %556 = vmatprep.subr.bf16.mxu0 %v577_v2 }
  0x87   :  { %vm38_vm8 = vcmp.eq.s32.totalorder %v34_v12, %v37_v18 }
  0x88   :  { %v468_v19 = vsel %vm38_vm8, 1.0, %v580_v6 }
  0x8c   :  { %511 = vmatmul.mubr.msk.f32.vlgmr.msra.gmra.mrb[0].mxu0 %vm129_vm9, %v468_v19 }
  0x8d   :  { %532 = vmatprep.mubr.msk.f32.mxu0 %vm579_vm3, %v580_v6  ;;  %558 = vmatpush3.bf16.msra.mxu0 %v557_v25 }
  0x8e   :  { %559 = vmatprep.subr.bf16.mxu0 %v577_v2 }
  0x91   :  { %561 = vmatpush3.bf16.msra.mxu0 %v560_v31 }
 0x15f   :  { %v203_v26 = vpop.f32.mrb[0].mxu0 }
 0x160   :  { %v207_v27 = vmax.f32 %v203_v26, 0.0  ;;  %v512_v28 = vpop.f32.mrb[1].mxu0 }
 0x162   :  { %522 = vmatmul.mubr.msk.f32.vlgmr.msra.gmra.mrb[0].mxu1 %vm219_vm10, %v207_v27 }
 0x163   :  { %539 = vmatprep.mubr.msk.f32.mxu1 %vm579_vm3, %v580_v6  ;;  %564 = vmatpush3.bf16.msra.mxu1 %v563_v39 }
 0x235   :  { %v289_v33 = vpop.f32.mrb[0].mxu1 }
 0x236   :  { %v290_v34 = vadd.f32 %v474_v32, %v289_v33  ;;  %v523_v35 = vpop.f32.mrb[1].mxu1 }
 0x238   :  { %v293_v36 = vmax.f32 %v290_v34, 0.0 }
 0x23a   :  { %533 = vmatmul.mubr.msk.f32.vlgmr.msra.gmra.mrb[2].mxu0 %vm219_vm10, %v293_v36 }
 0x30d   :  { %v374_v41 = vpop.f32.mrb[2].mxu0 }
 0x30e   :  { %v375_v42 = vadd.f32 %v476_v40, %v374_v41  ;;  %v534_v43 = vpop.f32.mrb[3].mxu0 }
 0x310   :  { %v378_v44 = vmax.f32 %v375_v42, 0.0 }
 0x312   :  { %540 = vmatmul.mubr.msk.f32.vlgmr.msra.gmra.mrb[2].mxu1 %vm388_vm11, %v378_v44 }
 0x3e5   :  { %v458_v46 = vpop.f32.mrb[2].mxu1 }
 0x3e6   :  { %v459_v47 = vadd.f32 %v478_v45, %v458_v46  ;;  %v541_v48 = vpop.f32.mrb[3].mxu1 }
 0x3e8   :  { %463 = vst.msk [vmem:[%s705_s9] sm:$0xff] %vm462_vm12, %v459_v47 }

</bundles_post_ra>
